<compile_context>
chip_gen: v6e
topology: v6e:2x2x1
jax: 0.10.0
libtpu: 0.0.40
codegen_flags: <defaults>
</compile_context>

<pallas_src>
from functools import partial

import jax
import jax.numpy as jnp
from jax.experimental import pallas as pl
from jax.experimental.pallas import tpu as pltpu


def rnn_fc_kernel(x_ref, w_ih_ref, w_hh_ref, b_ref, w_fc_ref, b_fc_ref,
                  out_ref):
    """Single-invocation fused RNN + FC (no grid; all refs fully VMEM-resident).

    x_ref:    (T*Bp, I)  bf16, all timesteps, batch padded to Bp (multiple of 8)
    w_ih_ref: (I, H)     bf16, W_ih^T
    w_hh_ref: (H, H)     bf16, W_hh^T
    b_ref:    (1, H)     f32,  b_ih + b_hh (pre-summed)
    w_fc_ref: (H, Op)    bf16, W_fc^T, output dim padded to Op (multiple of 128)
    b_fc_ref: (1, Op)    f32
    out_ref:  (Bp, Op)   f32
    """
    TB = x_ref.shape[0]
    Bp = out_ref.shape[0]
    H = w_hh_ref.shape[0]
    T = TB // Bp

    # (1) Hoisted input projection: one bf16 MXU op covering every timestep,
    #     accumulated in f32 with the (loop-invariant) bias folded in.
    xw = jnp.dot(x_ref[...], w_ih_ref[...],
                 preferred_element_type=jnp.float32) + b_ref[...]   # (T*Bp, H) f32

    w_hh = w_hh_ref[...]          # bf16, stays resident in vregs (8 vregs)

    # (2) Recurrence, fully unrolled (T static & tiny). h / tanh stay in f32;
    #     only the matmul operand is cast to bf16. h_0 = 0 -> first step has
    #     no recurrent matmul.
    h = jnp.tanh(xw[0:Bp, :])
    for t in range(1, T):
        step = jnp.dot(h.astype(w_hh.dtype), w_hh,
                       preferred_element_type=jnp.float32)
        h = jnp.tanh(xw[t * Bp:(t + 1) * Bp, :] + step)

    # (3) FC head on the last hidden state; output slab is lane-dense
    #     (O padded to a multiple of 128 in the wrapper) -> unmasked vst.
    logits = (jnp.dot(h.astype(w_fc_ref.dtype), w_fc_ref[...],
                      preferred_element_type=jnp.float32) + b_fc_ref[...])
    out_ref[...] = logits.astype(out_ref.dtype)


def prepare_params(params):
    """One-time parameter glue: transposes, padding, bias pre-sum, bf16 casts.

    Done ONCE and cached by the caller; keeps pad/transpose/add XLA ops off the
    per-forward hot path.
    """
    H = params["w_hh"].shape[0]
    O = params["w_fc"].shape[0]
    Op = max(128, ((O + 127) // 128) * 128)
    return {
        "w_ih_t": params["w_ih"].T.astype(jnp.bfloat16),                    # (I, H)
        "w_hh_t": params["w_hh"].T.astype(jnp.bfloat16),                    # (H, H)
        "b": (params["b_ih"] + params["b_hh"]).astype(jnp.float32).reshape(1, H),
        "w_fc_t": jnp.pad(params["w_fc"].T,
                          ((0, 0), (0, Op - O))).astype(jnp.bfloat16),      # (H, Op)
        "b_fc": jnp.pad(params["b_fc"],
                        (0, Op - O)).astype(jnp.float32).reshape(1, Op),    # (1, Op)
    }


@partial(jax.jit, static_argnames=("output_size",))
def rnn_model_forward(x, prep, *, output_size):
    """x: (T, B, I) float32. prep: output of prepare_params. Returns (B, O) f32."""
    T, B, I = x.shape
    H = prep["w_hh_t"].shape[0]
    Op = prep["w_fc_t"].shape[1]

    # Pad batch to a full sublane group so each timestep slice is one vreg and
    # the final store is sublane/lane aligned.
    Bp = max(8, ((B + 7) // 8) * 8)
    x_p = jnp.pad(x, ((0, 0), (0, Bp - B), (0, 0)))
    x_p = x_p.reshape(T * Bp, I).astype(jnp.bfloat16)

    flops = (2 * T * Bp * I * H          # hoisted input projection
             + 2 * (T - 1) * Bp * H * H  # recurrence matmuls
             + 2 * Bp * H * Op)          # FC head
    bytes_accessed = (2 * (x_p.size + prep["w_ih_t"].size
                           + prep["w_hh_t"].size + prep["w_fc_t"].size)
                      + 4 * (prep["b"].size + prep["b_fc"].size + Bp * Op))
    cost = pl.CostEstimate(flops=flops,
                           transcendentals=T * Bp * H,
                           bytes_accessed=bytes_accessed)

    vmem = pl.BlockSpec(memory_space=pltpu.MemorySpace.VMEM)
    out_padded = pl.pallas_call(
        rnn_fc_kernel,
        out_shape=jax.ShapeDtypeStruct((Bp, Op), jnp.float32),
        in_specs=[vmem] * 6,
        out_specs=vmem,
        cost_estimate=cost,
    )(x_p, prep["w_ih_t"], prep["w_hh_t"], prep["b"],
      prep["w_fc_t"], prep["b_fc"])

    return out_padded[:B, :output_size]


def init_params(key, input_size, hidden_size, output_size):
    """Deterministic init mimicking PyTorch's uniform(-1/sqrt(H), 1/sqrt(H))."""
    ks = jax.random.split(key, 6)
    bound = 1.0 / jnp.sqrt(hidden_size)
    u = lambda k, shape: jax.random.uniform(
        k, shape, jnp.float32, minval=-bound, maxval=bound)
    return {
        "w_ih": u(ks[0], (hidden_size, input_size)),
        "w_hh": u(ks[1], (hidden_size, hidden_size)),
        "b_ih": u(ks[2], (hidden_size,)),
        "b_hh": u(ks[3], (hidden_size,)),
        "w_fc": u(ks[4], (output_size, hidden_size)),
        "b_fc": u(ks[5], (output_size,)),
    }


def rnn_model_reference(x, params):
    """Pure-JAX f32 reference (same math as nn.RNN + nn.Linear)."""
    T, B, _ = x.shape
    H = params["w_hh"].shape[0]
    h = jnp.zeros((B, H), jnp.float32)
    for t in range(T):
        h = jnp.tanh(x[t] @ params["w_ih"].T + params["b_ih"]
                     + h @ params["w_hh"].T + params["b_hh"])
    return h @ params["w_fc"].T + params["b_fc"]


if __name__ == "__main__":
    # Shapes consistent with the module: hidden_size=128 (as in the spec),
    # seq=8, batch=2, input=16. output_size stands in for len(language_names)
    # (degenerate 0 in the spec); use 8.
    seq_len, batch, input_size, hidden, output = 8, 2, 16, 128, 8

    key = jax.random.PRNGKey(0)
    k_x, k_p = jax.random.split(key)
    x = jax.random.normal(k_x, (seq_len, batch, input_size), jnp.float32)
    params = init_params(k_p, input_size, hidden, output)

    # Parameter glue done once, off the hot path.
    prep = prepare_params(params)

    out = rnn_model_forward(x, prep, output_size=output)
    out = jax.block_until_ready(out)

    ref = rnn_model_reference(x, params)
    assert out.shape == (batch, output)
    # bf16 MXU operands over an 8-step tanh recurrence -> loosened tolerance.
    assert jnp.allclose(out, ref, atol=5e-2, rtol=5e-2), "mismatch vs reference"

    print("KERNEL_OK")
</pallas_src>

<mosaic_0001>
module attributes {stable_mosaic.version = 11 : i64} {
  func.func @rnn_fc_kernel(%arg0: memref<64x16xbf16, #tpu.memory_space<vmem>>, %arg1: memref<16x128xbf16, #tpu.memory_space<vmem>>, %arg2: memref<128x128xbf16, #tpu.memory_space<vmem>>, %arg3: memref<1x128xf32, #tpu.memory_space<vmem>>, %arg4: memref<128x128xbf16, #tpu.memory_space<vmem>>, %arg5: memref<1x128xf32, #tpu.memory_space<vmem>>, %arg6: memref<8x128xf32, #tpu.memory_space<vmem>>) attributes {dimension_semantics = [], scalar_prefetch = 0 : i64, scratch_operands = 0 : i64, tpu.core_type = #tpu.core_type<tc>} {
    %c0 = arith.constant 0 : index
    %c0_0 = arith.constant 0 : index
    %0 = vector.load %arg0[%c0, %c0_0] : memref<64x16xbf16, #tpu.memory_space<vmem>>, vector<64x16xbf16>
    %c0_1 = arith.constant 0 : index
    %c0_2 = arith.constant 0 : index
    %1 = vector.load %arg1[%c0_1, %c0_2] : memref<16x128xbf16, #tpu.memory_space<vmem>>, vector<16x128xbf16>
    %cst = arith.constant dense<0.000000e+00> : vector<64x128xf32>
    %2 = tpu.matmul %0, %1, %cst {dimension_numbers = #tpu.dot_dimension_numbers<[1], [0], [0], [1], [0, 0, 1, 1], [], []>} : vector<64x16xbf16>, vector<16x128xbf16>, vector<64x128xf32> -> vector<64x128xf32>
    %c0_3 = arith.constant 0 : index
    %c0_4 = arith.constant 0 : index
    %3 = vector.load %arg3[%c0_3, %c0_4] : memref<1x128xf32, #tpu.memory_space<vmem>>, vector<1x128xf32>
    %4 = vector.broadcast %3 : vector<1x128xf32> to vector<64x128xf32>
    %5 = arith.addf %2, %4 : vector<64x128xf32>
    %c0_5 = arith.constant 0 : index
    %c0_6 = arith.constant 0 : index
    %6 = vector.load %arg2[%c0_5, %c0_6] : memref<128x128xbf16, #tpu.memory_space<vmem>>, vector<128x128xbf16>
    %7 = vector.extract_strided_slice %5 {offsets = [0, 0], sizes = [8, 128], strides = [1, 1]} : vector<64x128xf32> to vector<8x128xf32>
    %8 = math.tanh %7 : vector<8x128xf32>
    %9 = arith.truncf %8 : vector<8x128xf32> to vector<8x128xbf16>
    %cst_7 = arith.constant dense<0.000000e+00> : vector<8x128xf32>
    %10 = tpu.matmul %9, %6, %cst_7 {dimension_numbers = #tpu.dot_dimension_numbers<[1], [0], [0], [1], [0, 0, 1, 1], [], []>} : vector<8x128xbf16>, vector<128x128xbf16>, vector<8x128xf32> -> vector<8x128xf32>
    %11 = vector.extract_strided_slice %5 {offsets = [8, 0], sizes = [8, 128], strides = [1, 1]} : vector<64x128xf32> to vector<8x128xf32>
    %12 = arith.addf %11, %10 : vector<8x128xf32>
    %13 = math.tanh %12 : vector<8x128xf32>
    %14 = arith.truncf %13 : vector<8x128xf32> to vector<8x128xbf16>
    %cst_8 = arith.constant dense<0.000000e+00> : vector<8x128xf32>
    %15 = tpu.matmul %14, %6, %cst_8 {dimension_numbers = #tpu.dot_dimension_numbers<[1], [0], [0], [1], [0, 0, 1, 1], [], []>} : vector<8x128xbf16>, vector<128x128xbf16>, vector<8x128xf32> -> vector<8x128xf32>
    %16 = vector.extract_strided_slice %5 {offsets = [16, 0], sizes = [8, 128], strides = [1, 1]} : vector<64x128xf32> to vector<8x128xf32>
    %17 = arith.addf %16, %15 : vector<8x128xf32>
    %18 = math.tanh %17 : vector<8x128xf32>
    %19 = arith.truncf %18 : vector<8x128xf32> to vector<8x128xbf16>
    %cst_9 = arith.constant dense<0.000000e+00> : vector<8x128xf32>
    %20 = tpu.matmul %19, %6, %cst_9 {dimension_numbers = #tpu.dot_dimension_numbers<[1], [0], [0], [1], [0, 0, 1, 1], [], []>} : vector<8x128xbf16>, vector<128x128xbf16>, vector<8x128xf32> -> vector<8x128xf32>
    %21 = vector.extract_strided_slice %5 {offsets = [24, 0], sizes = [8, 128], strides = [1, 1]} : vector<64x128xf32> to vector<8x128xf32>
    %22 = arith.addf %21, %20 : vector<8x128xf32>
    %23 = math.tanh %22 : vector<8x128xf32>
    %24 = arith.truncf %23 : vector<8x128xf32> to vector<8x128xbf16>
    %cst_10 = arith.constant dense<0.000000e+00> : vector<8x128xf32>
    %25 = tpu.matmul %24, %6, %cst_10 {dimension_numbers = #tpu.dot_dimension_numbers<[1], [0], [0], [1], [0, 0, 1, 1], [], []>} : vector<8x128xbf16>, vector<128x128xbf16>, vector<8x128xf32> -> vector<8x128xf32>
    %26 = vector.extract_strided_slice %5 {offsets = [32, 0], sizes = [8, 128], strides = [1, 1]} : vector<64x128xf32> to vector<8x128xf32>
    %27 = arith.addf %26, %25 : vector<8x128xf32>
    %28 = math.tanh %27 : vector<8x128xf32>
    %29 = arith.truncf %28 : vector<8x128xf32> to vector<8x128xbf16>
    %cst_11 = arith.constant dense<0.000000e+00> : vector<8x128xf32>
    %30 = tpu.matmul %29, %6, %cst_11 {dimension_numbers = #tpu.dot_dimension_numbers<[1], [0], [0], [1], [0, 0, 1, 1], [], []>} : vector<8x128xbf16>, vector<128x128xbf16>, vector<8x128xf32> -> vector<8x128xf32>
    %31 = vector.extract_strided_slice %5 {offsets = [40, 0], sizes = [8, 128], strides = [1, 1]} : vector<64x128xf32> to vector<8x128xf32>
    %32 = arith.addf %31, %30 : vector<8x128xf32>
    %33 = math.tanh %32 : vector<8x128xf32>
    %34 = arith.truncf %33 : vector<8x128xf32> to vector<8x128xbf16>
    %cst_12 = arith.constant dense<0.000000e+00> : vector<8x128xf32>
    %35 = tpu.matmul %34, %6, %cst_12 {dimension_numbers = #tpu.dot_dimension_numbers<[1], [0], [0], [1], [0, 0, 1, 1], [], []>} : vector<8x128xbf16>, vector<128x128xbf16>, vector<8x128xf32> -> vector<8x128xf32>
    %36 = vector.extract_strided_slice %5 {offsets = [48, 0], sizes = [8, 128], strides = [1, 1]} : vector<64x128xf32> to vector<8x128xf32>
    %37 = arith.addf %36, %35 : vector<8x128xf32>
    %38 = math.tanh %37 : vector<8x128xf32>
    %39 = arith.truncf %38 : vector<8x128xf32> to vector<8x128xbf16>
    %cst_13 = arith.constant dense<0.000000e+00> : vector<8x128xf32>
    %40 = tpu.matmul %39, %6, %cst_13 {dimension_numbers = #tpu.dot_dimension_numbers<[1], [0], [0], [1], [0, 0, 1, 1], [], []>} : vector<8x128xbf16>, vector<128x128xbf16>, vector<8x128xf32> -> vector<8x128xf32>
    %41 = vector.extract_strided_slice %5 {offsets = [56, 0], sizes = [8, 128], strides = [1, 1]} : vector<64x128xf32> to vector<8x128xf32>
    %42 = arith.addf %41, %40 : vector<8x128xf32>
    %43 = math.tanh %42 : vector<8x128xf32>
    %44 = arith.truncf %43 : vector<8x128xf32> to vector<8x128xbf16>
    %c0_14 = arith.constant 0 : index
    %c0_15 = arith.constant 0 : index
    %45 = vector.load %arg4[%c0_14, %c0_15] : memref<128x128xbf16, #tpu.memory_space<vmem>>, vector<128x128xbf16>
    %cst_16 = arith.constant dense<0.000000e+00> : vector<8x128xf32>
    %46 = tpu.matmul %44, %45, %cst_16 {dimension_numbers = #tpu.dot_dimension_numbers<[1], [0], [0], [1], [0, 0, 1, 1], [], []>} : vector<8x128xbf16>, vector<128x128xbf16>, vector<8x128xf32> -> vector<8x128xf32>
    %c0_17 = arith.constant 0 : index
    %c0_18 = arith.constant 0 : index
    %47 = vector.load %arg5[%c0_17, %c0_18] : memref<1x128xf32, #tpu.memory_space<vmem>>, vector<1x128xf32>
    %48 = vector.broadcast %47 : vector<1x128xf32> to vector<8x128xf32>
    %49 = arith.addf %46, %48 : vector<8x128xf32>
    %c0_19 = arith.constant 0 : index
    %c0_20 = arith.constant 0 : index
    %50 = vector.load %arg6[%c0_19, %c0_20] : memref<8x128xf32, #tpu.memory_space<vmem>>, vector<8x128xf32>
    tpu.vector_store %arg6[%c0_19, %c0_20], %49 {strides = array<i32>} : memref<8x128xf32, #tpu.memory_space<vmem>>, vector<8x128xf32>,
    return
  }
}

</mosaic_0001>

<bundles_post_ra>
// kernel: rnn_model_forward.1
= control target key start
LH: loop header
LB: loop body
LE: loop exit
PB: predicated region body
PF: predicated region fallthrough
CT: control target
= control target key end

     0   :  { %11 = vsyncpa [#allocation3], 0  ;;  %s1287_s0 = inlined_call_operand.vmem [shape: bf16[64,16], index: 0, kind: input, shape index: {}]   ;;  %s1288_s1 = inlined_call_operand.vmem [shape: bf16[16,128], index: 1, kind: input, shape index: {}]   ;;  %s1289_s2 = inlined_call_operand.vmem [shape: bf16[128,128], index: 2, kind: input, shape index: {}]   ;;  %s1290_s3 = inlined_call_operand.vmem [shape: f32[1,128], index: 3, kind: input, shape index: {}]   ;;  %s1291_s4 = inlined_call_operand.hbm [shape: bf16[128,128], index: 4, kind: input, shape index: {}]   ;;  %s1292_s5 = inlined_call_operand.hbm [shape: f32[1,128], index: 5, kind: input, shape index: {}]   ;;  %s1293_s6 = inlined_call_operand.vmem [shape: f32[8,128], index: 6, kind: output, shape index: {}]  }
   0x1   :  { %12 = vsyncpa [#allocation5], 0  ;;  %s1017_s21 = smov [#allocation2]  }
   0x2   :  { %s26_s22 = sshll.u32 %s1017_s21, 4  ;;  %s27_s22 = int_to_ptr.vmem [resolvable:$true] %s26_s22 }
   0x3   :  { %s981_s23 = scalar_lea.vmem %s27_s22, 1024  ;;  %p986_p1 = scmp.lt.s32.totalorder %s27_s22, %s27_s22 }
   0x4   :  { %p982_p0 = scmp.ne.s32.totalorder %s27_s22, %s981_s23  ;;  %p987_p2 = scmp.lt.s32.totalorder %s981_s23, %s981_s23 }
   0x6   :  { %p988_p3 = por %p987_p2, %p986_p1 }
   0x8   :  { %p989_p4 = pnand %p988_p3, %p982_p0 }
   0xa   :  { %992 = shalt.err (!%p989_p4)
}
   0xb   :  { %s1018_s24 = smov 64   ;;  %s1019_s25 = smov 4  }
   0xc   :  { %32 = dma.hbm_to_vmem [thread:$0]  %s1291_s4, 1024, %s27_s22, [#allocation3], %s1018_s24, %s1018_s24, %s1019_s25  }
   0xd   :  { %s1020_s28 = smov [#allocation4]  }
   0xe   :  { %s39_s29 = sshll.u32 %s1020_s28, 4  ;;  %s40_s29 = int_to_ptr.vmem [resolvable:$true] %s39_s29 }
   0xf   :  { %s1001_s30 = scalar_lea.vmem %s40_s29, 16  ;;  %s1005_s7 = scalar_lea.vmem %s40_s29, 32 }
  0x10   :  { %p1002_p5 = scmp.ne.s32.totalorder %s40_s29, %s1001_s30  ;;  %p1006_p6 = scmp.lt.s32.totalorder %s40_s29, %s40_s29 }
  0x11   :  { %p1007_p7 = scmp.lt.s32.totalorder %s1005_s7, %s1001_s30 }
  0x13   :  { %p1008_p8 = por %p1007_p7, %p1006_p6 }
  0x15   :  { %p1009_p9 = pnand %p1008_p8, %p1002_p5 }
  0x17   :  { %1012 = shalt.err (!%p1009_p9)
}
  0x18   :  { %42 = dma.hbm_to_vmem [thread:$0]  %s1292_s5, 16, %s40_s29, [#allocation5]  }
  0x19   :  { %1013 = dma.done.wait [#allocation3], 1024  }
  0x1a   :  { %1014 = vsyncadd [#allocation3], 4294966272 }
  0x1b   :  { %1015 = dma.done.wait [#allocation5], 16  }
  0x1c   :  { %1016 = vsyncadd [#allocation5], 4294967280  ;;  %v1021_v0 = vmov 0.0   ;;  %v936_v1 = vld [vmem:[%s1288_s1] sm:$0xff]   ;;  %vm93_vm0 = vcmask 130048   ;;  %v938_v3 = vld [vmem:[%s1287_s0 + $0x8] sm:$0xff]  }
  0x1d   :  { %770 = vmatprep.subr.bf16.mxu1 %v1021_v0  ;;  %v937_v2 = vld [vmem:[%s1287_s0] sm:$0xff]   ;;  %760 = vmatprep.subr.bf16.mxu0 %v936_v1  ;;  %v1078_v4 = vld [vmem:[%s1289_s2 + $0x38] sm:$0xff]   ;;  %v1085_v5 = vld [vmem:[%s1289_s2 + $0x30] sm:$0xff]   ;;  %vm1022_vm1 = vmmov 0  }
  0x1e   :  { %761 = vmatpush3.bf16.msra.mxu0 %v936_v1  ;;  %762 = vmatprep.mubr.msk.bf16.mxu0 %vm93_vm0, %v937_v2  ;;  %v1092_v6 = vld [vmem:[%s1289_s2 + $0x28] sm:$0xff]   ;;  %v1107_v7 = vld [vmem:[%s1289_s2 + $0x20] sm:$0xff]   ;;  %v1116_v8 = vld [vmem:[%s1289_s2 + $0x18] sm:$0xff]  }
  0x1f   :  { %790 = vmatprep.subr.bf16.mxu0 %v1021_v0  ;;  %771 = vmatpush3.bf16.msra.mxu1 %v1078_v4  ;;  %v1124_v9 = vld [vmem:[%s1289_s2 + $0x10] sm:$0xff]   ;;  %v1133_v10 = vld [vmem:[%s1289_s2 + $0x8] sm:$0xff]   ;;  %v1142_v11 = vld [vmem:[%s1289_s2] sm:$0xff]  }
  0x20   :  { %772 = vmatprep.subr.bf16.mxu1 %v1021_v0  ;;  %786 = vmatprep.mubr.msk.bf16.mxu1 %vm1022_vm1, %v1021_v0  ;;  %v1156_v13 = vld [vmem:[%s1290_s3] ss:$0 sm:$0xff]  ;;  %v947_v18 = vld [vmem:[%s1287_s0 + $0x10] sm:$0xff]   ;;  %v948_v19 = vld [vmem:[%s1287_s0 + $0x18] sm:$0xff]  }
  0x21   :  { %763 = vmatmul.mubr.msk.bf16.vlgmr.msra.gmra.mxu0 %vm93_vm0, %v938_v3  ;;  %v949_v3 = vld [vmem:[#allocation2 + $0x38] sm:$0xff]  }
  0x22   :  { %791 = vmatpush3.bf16.msra.mxu0 %v1078_v4  ;;  %766 = vmatprep.mubr.msk.bf16.mxu0 %vm93_vm0, %v947_v18  ;;  %v955_v18 = vld [vmem:[#allocation2 + $0x8] sm:$0xff]  }
  0x23   :  { %792 = vmatprep.subr.bf16.mxu0 %v1021_v0  ;;  %773 = vmatpush3.bf16.msra.mxu1 %v1085_v5 }
  0x24   :  { %774 = vmatprep.subr.bf16.mxu1 %v1021_v0 }
  0x26   :  { %793 = vmatpush3.bf16.msra.mxu0 %v1085_v5 }
  0x27   :  { %794 = vmatprep.subr.bf16.mxu0 %v1021_v0  ;;  %775 = vmatpush3.bf16.msra.mxu1 %v1092_v6 }
  0x28   :  { %776 = vmatprep.subr.bf16.mxu1 %v1021_v0 }
  0x29   :  { %767 = vmatmul.mubr.msk.bf16.gmra.mxu0 %vm93_vm0, %v948_v19  ;;  %v956_v19 = vld [vmem:[#allocation2] sm:$0xff]  }
  0x2a   :  { %795 = vmatpush3.bf16.msra.mxu0 %v1092_v6  ;;  %806 = vmatprep.mubr.msk.bf16.mxu0 %vm1022_vm1, %v1021_v0 }
  0x2b   :  { %796 = vmatprep.subr.bf16.mxu0 %v1021_v0  ;;  %777 = vmatpush3.bf16.msra.mxu1 %v1107_v7 }
  0x2c   :  { %778 = vmatprep.subr.bf16.mxu1 %v1021_v0 }
  0x2e   :  { %797 = vmatpush3.bf16.msra.mxu0 %v1107_v7 }
  0x2f   :  { %798 = vmatprep.subr.bf16.mxu0 %v1021_v0  ;;  %779 = vmatpush3.bf16.msra.mxu1 %v1116_v8 }
  0x30   :  { %780 = vmatprep.subr.bf16.mxu1 %v1021_v0 }
  0x32   :  { %799 = vmatpush3.bf16.msra.mxu0 %v1116_v8 }
  0x33   :  { %800 = vmatprep.subr.bf16.mxu0 %v1021_v0  ;;  %781 = vmatpush3.bf16.msra.mxu1 %v1124_v9 }
  0x34   :  { %782 = vmatprep.subr.bf16.mxu1 %v1021_v0 }
  0x36   :  { %801 = vmatpush3.bf16.msra.mxu0 %v1124_v9 }
  0x37   :  { %802 = vmatprep.subr.bf16.mxu0 %v1021_v0  ;;  %783 = vmatpush3.bf16.msra.mxu1 %v1133_v10 }
  0x38   :  { %784 = vmatprep.subr.bf16.mxu1 %v1021_v0 }
  0x3a   :  { %803 = vmatpush3.bf16.msra.mxu0 %v1133_v10 }
  0x3b   :  { %804 = vmatprep.subr.bf16.mxu0 %v1021_v0  ;;  %785 = vmatpush3.bf16.msra.mxu1 %v1142_v11 }
  0x3c   :  { %810 = vmatprep.subr.bf16.mxu1 %v1021_v0 }
  0x3e   :  { %805 = vmatpush3.bf16.msra.mxu0 %v1142_v11 }
  0x3f   :  { %830 = vmatprep.subr.bf16.mxu0 %v1021_v0 }
  0xe1   :  { %v1151_v12 = vpop.f32.mrf.mxu0 }
  0xe2   :  { %v149_v34 = vadd.f32 %v1151_v12, %v1156_v13 }
  0xe3   :  { %v140_v14 = vpop.f32.mrf.mxu0 }
  0xe4   :  { %v141_v15 = vadd.f32 %v1156_v13, %v140_v14 }
  0xe5   :  { %v765_v20 = vpop.f32.mrf.mxu0 }
  0xe6   :  { %957 = vtanh.f32 %v141_v15  ;;  %v152_v42 = vadd.f32 %v765_v20, %v1156_v13  ;;  %v952_v15 = vld [vmem:[#allocation2 + $0x20] sm:$0xff]  }
  0xe7   :  { %v143_v21 = vpop.f32.mrf.mxu0 }
  0xe8   :  { %v144_v22 = vadd.f32 %v1156_v13, %v143_v21 }
  0xe9   :  { %v1206_v30 = vpop.f32.mrf.mxu0 }
  0xeb   :  { %v156_v31 = vpop.f32.mrf.mxu0 }
  0xec   :  { %v157_v50 = vadd.f32 %v1156_v13, %v156_v31 }
  0xed   :  { %v1208_v32 = vpop.f32.mrf.mxu0 }
  0xee   :  { %v168_v20 = vadd.f32 %v1208_v32, %v1156_v13 }
  0xef   :  { %v1210_v33 = vpop.f32.mrf.mxu0 }
  0xf0   :  { %v160_v58 = vadd.f32 %v1156_v13, %v1210_v33 }
  0xf3   :  { %v958_v16 = vpop.eup %957 }
  0xf4   :  { %v188_v17 = vpack.c.bf16 %v958_v16, %v958_v16  ;;  %v953_v16 = vld [vmem:[#allocation2 + $0x18] sm:$0xff]  }
  0xf6   :  { %787 = vmatmul.mubr.bf16.vlgmr.msra.gmra.mxu1 %v188_v17  ;;  %v954_v17 = vld [vmem:[#allocation2 + $0x10] sm:$0xff]  }
  0xf7   :  { %811 = vmatpush3.bf16.msra.mxu1 %v1078_v4  ;;  %826 = vmatprep.mubr.msk.bf16.mxu1 %vm1022_vm1, %v1021_v0 }
  0xf8   :  { %812 = vmatprep.subr.bf16.mxu1 %v1021_v0 }
  0xfb   :  { %813 = vmatpush3.bf16.msra.mxu1 %v1085_v5 }
  0xfc   :  { %814 = vmatprep.subr.bf16.mxu1 %v1021_v0 }
  0xff   :  { %815 = vmatpush3.bf16.msra.mxu1 %v1092_v6 }
 0x100   :  { %816 = vmatprep.subr.bf16.mxu1 %v1021_v0 }
 0x103   :  { %817 = vmatpush3.bf16.msra.mxu1 %v1107_v7 }
 0x104   :  { %818 = vmatprep.subr.bf16.mxu1 %v1021_v0 }
 0x107   :  { %819 = vmatpush3.bf16.msra.mxu1 %v1116_v8 }
 0x108   :  { %820 = vmatprep.subr.bf16.mxu1 %v1021_v0 }
 0x10b   :  { %821 = vmatpush3.bf16.msra.mxu1 %v1124_v9 }
 0x10c   :  { %822 = vmatprep.subr.bf16.mxu1 %v1021_v0 }
 0x10f   :  { %823 = vmatpush3.bf16.msra.mxu1 %v1133_v10 }
 0x110   :  { %824 = vmatprep.subr.bf16.mxu1 %v1021_v0 }
 0x113   :  { %825 = vmatpush3.bf16.msra.mxu1 %v1142_v11 }
 0x114   :  { %850 = vmatprep.subr.bf16.mxu1 %v1021_v0 }
 0x1b6   :  { %v271_v23 = vpop.f32.mrf.mxu1 }
 0x1b7   :  { %v277_v24 = vadd.f32 %v271_v23, %v144_v22 }
 0x1b8   :  { %v788_v25 = vpop.f32.mrf.mxu1 }
 0x1b9   :  { %959 = vtanh.f32 %v277_v24 }
 0x1ba   :  { %v274_v26 = vpop.f32.mrf.mxu1 }
 0x1bc   :  { %v789_v27 = vpop.f32.mrf.mxu1 }
 0x1c6   :  { %v960_v28 = vpop.eup %959 }
 0x1c7   :  { %v279_v29 = vpack.c.bf16 %v960_v28, %v960_v28  ;;  %v674_v28 = vld [vmem:[#allocation4] ss:$0 sm:$0xff] }
 0x1c9   :  { %807 = vmatmul.mubr.bf16.vlgmr.msra.gmra.mxu0 %v279_v29 }
 0x1ca   :  { %831 = vmatpush3.bf16.msra.mxu0 %v1078_v4  ;;  %846 = vmatprep.mubr.msk.bf16.mxu0 %vm1022_vm1, %v1021_v0 }
 0x1cb   :  { %832 = vmatprep.subr.bf16.mxu0 %v1021_v0 }
 0x1ce   :  { %833 = vmatpush3.bf16.msra.mxu0 %v1085_v5 }
 0x1cf   :  { %834 = vmatprep.subr.bf16.mxu0 %v1021_v0 }
 0x1d2   :  { %835 = vmatpush3.bf16.msra.mxu0 %v1092_v6 }
 0x1d3   :  { %836 = vmatprep.subr.bf16.mxu0 %v1021_v0 }
 0x1d6   :  { %837 = vmatpush3.bf16.msra.mxu0 %v1107_v7 }
 0x1d7   :  { %838 = vmatprep.subr.bf16.mxu0 %v1021_v0 }
 0x1da   :  { %839 = vmatpush3.bf16.msra.mxu0 %v1116_v8 }
 0x1db   :  { %840 = vmatprep.subr.bf16.mxu0 %v1021_v0 }
 0x1de   :  { %841 = vmatpush3.bf16.msra.mxu0 %v1124_v9 }
 0x1df   :  { %842 = vmatprep.subr.bf16.mxu0 %v1021_v0 }
 0x1e2   :  { %843 = vmatpush3.bf16.msra.mxu0 %v1133_v10 }
 0x1e3   :  { %844 = vmatprep.subr.bf16.mxu0 %v1021_v0 }
 0x1e6   :  { %845 = vmatpush3.bf16.msra.mxu0 %v1142_v11 }
 0x1e7   :  { %870 = vmatprep.subr.bf16.mxu0 %v1021_v0 }
 0x289   :  { %v314_v35 = vpop.f32.mrf.mxu0 }
 0x28a   :  { %v320_v36 = vadd.f32 %v314_v35, %v149_v34 }
 0x28b   :  { %v808_v37 = vpop.f32.mrf.mxu0 }
 0x28c   :  { %961 = vtanh.f32 %v320_v36 }
 0x28d   :  { %v317_v38 = vpop.f32.mrf.mxu0 }
 0x28f   :  { %v809_v39 = vpop.f32.mrf.mxu0 }
 0x299   :  { %v962_v40 = vpop.eup %961 }
 0x29a   :  { %v322_v41 = vpack.c.bf16 %v962_v40, %v962_v40 }
 0x29c   :  { %827 = vmatmul.mubr.bf16.vlgmr.msra.gmra.mxu1 %v322_v41 }
 0x29d   :  { %851 = vmatpush3.bf16.msra.mxu1 %v1078_v4  ;;  %866 = vmatprep.mubr.msk.bf16.mxu1 %vm1022_vm1, %v1021_v0 }
 0x29e   :  { %852 = vmatprep.subr.bf16.mxu1 %v1021_v0 }
 0x2a1   :  { %853 = vmatpush3.bf16.msra.mxu1 %v1085_v5 }
 0x2a2   :  { %854 = vmatprep.subr.bf16.mxu1 %v1021_v0 }
 0x2a5   :  { %855 = vmatpush3.bf16.msra.mxu1 %v1092_v6 }
 0x2a6   :  { %856 = vmatprep.subr.bf16.mxu1 %v1021_v0 }
 0x2a9   :  { %857 = vmatpush3.bf16.msra.mxu1 %v1107_v7 }
 0x2aa   :  { %858 = vmatprep.subr.bf16.mxu1 %v1021_v0 }
 0x2ad   :  { %859 = vmatpush3.bf16.msra.mxu1 %v1116_v8 }
 0x2ae   :  { %860 = vmatprep.subr.bf16.mxu1 %v1021_v0 }
 0x2b1   :  { %861 = vmatpush3.bf16.msra.mxu1 %v1124_v9 }
 0x2b2   :  { %862 = vmatprep.subr.bf16.mxu1 %v1021_v0 }
 0x2b5   :  { %863 = vmatpush3.bf16.msra.mxu1 %v1133_v10 }
 0x2b6   :  { %864 = vmatprep.subr.bf16.mxu1 %v1021_v0 }
 0x2b9   :  { %865 = vmatpush3.bf16.msra.mxu1 %v1142_v11 }
 0x2ba   :  { %890 = vmatprep.subr.bf16.mxu1 %v1021_v0 }
 0x35c   :  { %v357_v43 = vpop.f32.mrf.mxu1 }
 0x35d   :  { %v363_v44 = vadd.f32 %v357_v43, %v152_v42 }
 0x35e   :  { %v828_v45 = vpop.f32.mrf.mxu1 }
 0x35f   :  { %963 = vtanh.f32 %v363_v44 }
 0x360   :  { %v360_v46 = vpop.f32.mrf.mxu1 }
 0x362   :  { %v829_v47 = vpop.f32.mrf.mxu1 }
 0x36c   :  { %v964_v48 = vpop.eup %963 }
 0x36d   :  { %v365_v49 = vpack.c.bf16 %v964_v48, %v964_v48 }
 0x36f   :  { %847 = vmatmul.mubr.bf16.vlgmr.msra.gmra.mxu0 %v365_v49 }
 0x370   :  { %871 = vmatpush3.bf16.msra.mxu0 %v1078_v4  ;;  %886 = vmatprep.mubr.msk.bf16.mxu0 %vm1022_vm1, %v1021_v0 }
 0x371   :  { %872 = vmatprep.subr.bf16.mxu0 %v1021_v0 }
 0x374   :  { %873 = vmatpush3.bf16.msra.mxu0 %v1085_v5 }
 0x375   :  { %874 = vmatprep.subr.bf16.mxu0 %v1021_v0 }
 0x378   :  { %875 = vmatpush3.bf16.msra.mxu0 %v1092_v6 }
 0x379   :  { %876 = vmatprep.subr.bf16.mxu0 %v1021_v0 }
 0x37c   :  { %877 = vmatpush3.bf16.msra.mxu0 %v1107_v7 }
 0x37d   :  { %878 = vmatprep.subr.bf16.mxu0 %v1021_v0 }
 0x380   :  { %879 = vmatpush3.bf16.msra.mxu0 %v1116_v8 }
 0x381   :  { %880 = vmatprep.subr.bf16.mxu0 %v1021_v0 }
 0x384   :  { %881 = vmatpush3.bf16.msra.mxu0 %v1124_v9 }
 0x385   :  { %882 = vmatprep.subr.bf16.mxu0 %v1021_v0 }
 0x388   :  { %883 = vmatpush3.bf16.msra.mxu0 %v1133_v10 }
 0x389   :  { %884 = vmatprep.subr.bf16.mxu0 %v1021_v0 }
 0x38c   :  { %885 = vmatpush3.bf16.msra.mxu0 %v1142_v11 }
 0x38d   :  { %910 = vmatprep.subr.bf16.mxu0 %v1021_v0 }
 0x42f   :  { %v400_v51 = vpop.f32.mrf.mxu0 }
 0x430   :  { %v406_v52 = vadd.f32 %v400_v51, %v157_v50 }
 0x431   :  { %v848_v53 = vpop.f32.mrf.mxu0 }
 0x432   :  { %965 = vtanh.f32 %v406_v52 }
 0x433   :  { %v403_v54 = vpop.f32.mrf.mxu0 }
 0x435   :  { %v849_v55 = vpop.f32.mrf.mxu0 }
 0x43f   :  { %v966_v56 = vpop.eup %965 }
 0x440   :  { %v408_v57 = vpack.c.bf16 %v966_v56, %v966_v56 }
 0x442   :  { %867 = vmatmul.mubr.bf16.vlgmr.msra.gmra.mxu1 %v408_v57 }
 0x443   :  { %891 = vmatpush3.bf16.msra.mxu1 %v1078_v4  ;;  %906 = vmatprep.mubr.msk.bf16.mxu1 %vm1022_vm1, %v1021_v0  ;;  %v950_v4 = vld [vmem:[#allocation2 + $0x30] sm:$0xff]  }
 0x444   :  { %892 = vmatprep.subr.bf16.mxu1 %v1021_v0 }
 0x447   :  { %893 = vmatpush3.bf16.msra.mxu1 %v1085_v5  ;;  %v951_v5 = vld [vmem:[#allocation2 + $0x28] sm:$0xff]  }
 0x448   :  { %894 = vmatprep.subr.bf16.mxu1 %v1021_v0 }
 0x44b   :  { %895 = vmatpush3.bf16.msra.mxu1 %v1092_v6  ;;  %v165_v6 = vadd.f32 %v1206_v30, %v1156_v13 }
 0x44c   :  { %896 = vmatprep.subr.bf16.mxu1 %v1021_v0 }
 0x44f   :  { %897 = vmatpush3.bf16.msra.mxu1 %v1107_v7 }
 0x450   :  { %898 = vmatprep.subr.bf16.mxu1 %v1021_v0 }
 0x453   :  { %899 = vmatpush3.bf16.msra.mxu1 %v1116_v8 }
 0x454   :  { %900 = vmatprep.subr.bf16.mxu1 %v1021_v0 }
 0x457   :  { %901 = vmatpush3.bf16.msra.mxu1 %v1124_v9 }
 0x458   :  { %902 = vmatprep.subr.bf16.mxu1 %v1021_v0 }
 0x45b   :  { %903 = vmatpush3.bf16.msra.mxu1 %v1133_v10 }
 0x45c   :  { %904 = vmatprep.subr.bf16.mxu1 %v1021_v0 }
 0x45f   :  { %905 = vmatpush3.bf16.msra.mxu1 %v1142_v11 }
 0x502   :  { %v443_v59 = vpop.f32.mrf.mxu1 }
 0x503   :  { %v449_v60 = vadd.f32 %v443_v59, %v160_v58 }
 0x504   :  { %v868_v61 = vpop.f32.mrf.mxu1 }
 0x505   :  { %967 = vtanh.f32 %v449_v60 }
 0x506   :  { %v446_v62 = vpop.f32.mrf.mxu1 }
 0x508   :  { %v869_v63 = vpop.f32.mrf.mxu1 }
 0x512   :  { %v968_v1 = vpop.eup %967 }
 0x513   :  { %v451_v2 = vpack.c.bf16 %v968_v1, %v968_v1 }
 0x515   :  { %887 = vmatmul.mubr.bf16.vlgmr.msra.gmra.mxu0 %v451_v2 }
 0x516   :  { %926 = vmatprep.mubr.msk.bf16.mxu0 %vm1022_vm1, %v1021_v0  ;;  %911 = vmatpush3.bf16.msra.mxu0 %v949_v3 }
 0x517   :  { %912 = vmatprep.subr.bf16.mxu0 %v1021_v0 }
 0x51a   :  { %913 = vmatpush3.bf16.msra.mxu0 %v950_v4 }
 0x51b   :  { %914 = vmatprep.subr.bf16.mxu0 %v1021_v0 }
 0x51e   :  { %915 = vmatpush3.bf16.msra.mxu0 %v951_v5 }
 0x51f   :  { %916 = vmatprep.subr.bf16.mxu0 %v1021_v0 }
 0x522   :  { %917 = vmatpush3.bf16.msra.mxu0 %v952_v15 }
 0x523   :  { %918 = vmatprep.subr.bf16.mxu0 %v1021_v0 }
 0x526   :  { %919 = vmatpush3.bf16.msra.mxu0 %v953_v16 }
 0x527   :  { %920 = vmatprep.subr.bf16.mxu0 %v1021_v0 }
 0x52a   :  { %921 = vmatpush3.bf16.msra.mxu0 %v954_v17 }
 0x52b   :  { %922 = vmatprep.subr.bf16.mxu0 %v1021_v0 }
 0x52e   :  { %923 = vmatpush3.bf16.msra.mxu0 %v955_v18 }
 0x52f   :  { %924 = vmatprep.subr.bf16.mxu0 %v1021_v0 }
 0x532   :  { %925 = vmatpush3.bf16.msra.mxu0 %v956_v19 }
 0x5d5   :  { %v486_v7 = vpop.f32.mrf.mxu0 }
 0x5d6   :  { %v492_v8 = vadd.f32 %v486_v7, %v165_v6 }
 0x5d7   :  { %v888_v9 = vpop.f32.mrf.mxu0 }
 0x5d8   :  { %969 = vtanh.f32 %v492_v8 }
 0x5d9   :  { %v489_v10 = vpop.f32.mrf.mxu0 }
 0x5db   :  { %v889_v11 = vpop.f32.mrf.mxu0 }
 0x5e5   :  { %v970_v12 = vpop.eup %969 }
 0x5e6   :  { %v494_v14 = vpack.c.bf16 %v970_v12, %v970_v12 }
 0x5e8   :  { %907 = vmatmul.mubr.bf16.vlgmr.msra.gmra.mxu1 %v494_v14 }
 0x6a8   :  { %v529_v21 = vpop.f32.mrf.mxu1 }
 0x6a9   :  { %v535_v22 = vadd.f32 %v529_v21, %v168_v20 }
 0x6aa   :  { %v908_v23 = vpop.f32.mrf.mxu1 }
 0x6ab   :  { %971 = vtanh.f32 %v535_v22 }
 0x6ac   :  { %v532_v24 = vpop.f32.mrf.mxu1 }
 0x6ae   :  { %v909_v25 = vpop.f32.mrf.mxu1 }
 0x6b8   :  { %v972_v26 = vpop.eup %971 }
 0x6b9   :  { %v537_v27 = vpack.c.bf16 %v972_v26, %v972_v26 }
 0x6bb   :  { %927 = vmatmul.mubr.bf16.vlgmr.msra.gmra.mxu0 %v537_v27 }
 0x77b   :  { %v643_v29 = vpop.f32.mrf.mxu0 }
 0x77c   :  { %v644_v30 = vadd.f32 %v674_v28, %v643_v29 }
 0x77d   :  { %v928_v31 = vpop.f32.mrf.mxu0 }
 0x77e   :  { %649 = vst [vmem:[%s1293_s6] sm:$0xff] %v644_v30 }
 0x77f   :  { %v646_v0 = vpop.f32.mrf.mxu0 }
 0x781   :  { %v929_v33 = vpop.f32.mrf.mxu0 }
 0x782   :  { %654 = vsyncpa [#allocation3], 1 }
 0x783   :  { %655 = vsyncpa [#allocation5], 1 }

</bundles_post_ra>
